<compile_context>
chip_gen: v6e
topology: v6e:2x2x1
jax: 0.10.0
libtpu: 0.0.40
codegen_flags: <defaults>
</compile_context>

<pallas_src>
import jax
import jax.numpy as jnp
from jax import lax
from jax.experimental import pallas as pl
from jax.experimental.pallas import tpu as pltpu


MXU_LANES = 128  # fused weight padded to a full lane group -> single native MXU pass


def maxmil_fused_kernel(x_ref, wf_ref, bf_ref, y_ref):
    # Stream x in its HBM dtype; cast to the weight dtype on the VPU (cheap,
    # hidden under the x DMA) so the MXU runs a single bf16 pass.
    x = x_ref[...]
    if x.dtype != wf_ref.dtype:
        x = x.astype(wf_ref.dtype)
    # (tm, D) @ (D, 128) with f32 accumulation; only the first C columns are real.
    acc = jnp.dot(x, wf_ref[...], preferred_element_type=jnp.float32)
    c = y_ref.shape[-1]
    y_ref[...] = acc[:, :c] + bf_ref[...]


def _round_up(x, m):
    return (x + m - 1) // m * m


def _pick_tm(n, d, x_bytes, w_bytes, c, budget_bytes):
    """Largest row tile fitting the VMEM budget.

    The x tile and the narrow f32 output tile are double-buffered by the
    pipeline; the fused weight/bias are grid-invariant residents (counted
    conservatively as double-buffered).
    """
    n8 = _round_up(max(n, 8), 8)
    resident = 2 * (d * MXU_LANES * w_bytes + c * 4)
    per_row = 2 * d * x_bytes + 2 * c * 4
    avail = max(budget_bytes - resident, 8 * per_row)
    tm = max(8, avail // per_row)
    tm = min(tm, 2048)              # diminishing returns past ~512-1024 rows
    if tm >= 128:
        tm = (tm // 128) * 128      # MXU/lane-friendly alignment
    else:
        tm = (tm // 8) * 8          # at least sublane-aligned
    tm = min(tm, n8)                # never bigger than the (padded) batch
    return max((tm // 8) * 8, 8)


def maxmil_forward(x, w1, b1, w2, b2, *, tm=None,
                   compute_dtype=jnp.bfloat16,
                   vmem_budget_bytes=24 * 1024 * 1024):
    """x: (..., input_dim); w1: (input_dim, embed_dim); b1: (embed_dim,) or (1, embed_dim);
    w2: (embed_dim, 2); b2: (2,) or (1, 2).  Returns float32 logits of shape (..., 2)."""
    D = w1.shape[0]
    C = w2.shape[1]
    assert w1.shape[1] == w2.shape[0]
    assert x.shape[-1] == D and C <= MXU_LANES

    orig_lead = x.shape[:-1]
    x2 = x.reshape(-1, D)
    N = x2.shape[0]

    # --- Algebraic fusion of the two Linear layers (no nonlinearity). ---
    hp = lax.Precision.HIGHEST
    wf = jnp.dot(w1, w2, precision=hp, preferred_element_type=jnp.float32)       # (D, C)
    bf = jnp.dot(b1.reshape(1, -1), w2, precision=hp,
                 preferred_element_type=jnp.float32) + b2.reshape(1, -1)          # (1, C)

    # Pad the fused weight to a full 128-lane slab (single native MXU pass);
    # the padded columns are zeros and are never written back to HBM.
    wf_pad = jnp.pad(wf, ((0, 0), (0, MXU_LANES - C))).astype(compute_dtype)
    bf = bf.astype(jnp.float32)

    x_bytes = jnp.dtype(x2.dtype).itemsize
    w_bytes = jnp.dtype(compute_dtype).itemsize

    # --- Row tile + batch padding (arbitrary bag sizes). ---
    if tm is None:
        tm = _pick_tm(N, D, x_bytes, w_bytes, C, vmem_budget_bytes)
    tm = max(8, (int(tm) // 8) * 8)
    n_pad = _round_up(max(N, tm), tm)
    x_p = jnp.pad(x2, ((0, n_pad - N), (0, 0))) if n_pad != N else x2
    grid = (n_pad // tm,)

    # --- VMEM limit matching the chosen tile (headroom, < v7x's 64 MiB). ---
    vmem_needed = (2 * tm * D * x_bytes                     # x tile, double-buffered
                   + 2 * tm * C * 4                         # narrow out tile, double-buffered
                   + 2 * (D * MXU_LANES * w_bytes + C * 4)  # fused weight / bias residents
                   + (2 << 20))                             # compiler scratch slack
    vmem_limit = int(min(max(int(vmem_needed * 1.25), 16 << 20), 48 << 20))

    cost = pl.CostEstimate(
        flops=2 * n_pad * D * MXU_LANES + n_pad * C,
        transcendentals=0,
        bytes_accessed=(n_pad * D * x_bytes                  # x read (native dtype)
                        + D * MXU_LANES * w_bytes + C * 4    # fused weight / bias read
                        + n_pad * C * 4),                    # narrow logits write
    )

    grid_spec = pltpu.PrefetchScalarGridSpec(
        num_scalar_prefetch=0,
        grid=grid,
        in_specs=[
            pl.BlockSpec((tm, D), lambda i: (i, 0)),          # streamed x tile
            pl.BlockSpec((D, MXU_LANES), lambda i: (0, 0)),   # fused weight (resident)
            pl.BlockSpec((1, C), lambda i: (0, 0)),           # fused bias (resident)
        ],
        # Narrow output: only the real C=2 logits are written back to HBM.
        out_specs=pl.BlockSpec((tm, C), lambda i: (i, 0)),
    )

    y_pad = pl.pallas_call(
        maxmil_fused_kernel,
        out_shape=jax.ShapeDtypeStruct((n_pad, C), jnp.float32),
        grid_spec=grid_spec,
        compiler_params=pltpu.CompilerParams(
            dimension_semantics=("parallel",),   # megacore-shardable on v7x
            vmem_limit_bytes=vmem_limit,
        ),
        cost_estimate=cost,
    )(x_p, wf_pad, bf)

    return y_pad[:N].reshape(orig_lead + (C,))


def maxmil_inference(x, w1, b1, w2, b2):
    """MaxMIL.inference(): argmax over class-1 logits, softmax of the selected
    instance, argmax of that.  Trivially cheap glue -> plain JAX outside the kernel."""
    D = w1.shape[0]
    logits = maxmil_forward(x.reshape(-1, D), w1, b1, w2, b2)
    idx = jnp.argmax(logits[:, 1])
    prob = jax.nn.softmax(logits[idx], axis=-1)
    return jnp.argmax(prob, axis=-1)


def init_params(key, input_dim, embed_dim):
    """nn.Linear-style init (uniform +/- 1/sqrt(fan_in)); weights stored (in, out)."""
    k1, k2, k3, k4 = jax.random.split(key, 4)
    bound1 = 1.0 / (input_dim ** 0.5)
    bound2 = 1.0 / (embed_dim ** 0.5)
    w1 = jax.random.uniform(k1, (input_dim, embed_dim), jnp.float32, -bound1, bound1)
    b1 = jax.random.uniform(k2, (1, embed_dim), jnp.float32, -bound1, bound1)
    w2 = jax.random.uniform(k3, (embed_dim, 2), jnp.float32, -bound2, bound2)
    b2 = jax.random.uniform(k4, (1, 2), jnp.float32, -bound2, bound2)
    return w1, b1, w2, b2


if __name__ == "__main__":
    input_dim = 32
    embed_dim = 32
    N = 22  # deliberately not a multiple of the tile/sublane: exercises padding

    key = jax.random.PRNGKey(0)
    kx, kp = jax.random.split(key)
    x = jax.random.normal(kx, (N, input_dim), dtype=jnp.float32)
    w1, b1, w2, b2 = init_params(kp, input_dim, embed_dim)

    # PyTorch-semantics reference: two stacked Linears in float32.
    y_ref = (x @ w1 + b1) @ w2 + b2

    # Default bf16-compute path (x streamed f32, cast in-kernel).
    y = jax.block_until_ready(maxmil_forward(x, w1, b1, w2, b2))
    assert y.shape == (N, 2) and y.dtype == jnp.float32

    # (a) Semantics check vs the unfused f32 reference (loose: bf16 operand
    #     rounding and TPU default matmul precision).
    assert jnp.allclose(y, y_ref, atol=2e-2, rtol=2e-2)

    # (b) Tight check vs an exact emulation of what the kernel computes.
    hp = lax.Precision.HIGHEST
    wf = jnp.dot(w1, w2, precision=hp, preferred_element_type=jnp.float32)
    bf = jnp.dot(b1, w2, precision=hp, preferred_element_type=jnp.float32) + b2
    y_emul = jnp.dot(x.astype(jnp.bfloat16), wf.astype(jnp.bfloat16),
                     preferred_element_type=jnp.float32) + bf
    assert jnp.allclose(y, y_emul, atol=1e-4, rtol=1e-4)

    # f32 compute path also compiles/runs (loose tolerance: default f32 matmul
    # precision may differ between the fused and unfused orderings).
    y32 = jax.block_until_ready(
        maxmil_forward(x, w1, b1, w2, b2, compute_dtype=jnp.float32))
    assert y32.shape == (N, 2) and y32.dtype == jnp.float32
    assert jnp.allclose(y32, y_ref, atol=2e-2, rtol=2e-2)

    # Inference glue (argmax/softmax) runs on top of the kernel's logits.
    pred = int(jax.block_until_ready(maxmil_inference(x, w1, b1, w2, b2)))
    assert pred in (0, 1)

    print("KERNEL_OK")
</pallas_src>

<mosaic_0001>
module attributes {stable_mosaic.version = 11 : i64} {
  func.func @maxmil_fused_kernel(%arg0: i32, %arg1: memref<24x32xf32, #tpu.memory_space<vmem>>, %arg2: memref<32x128xbf16, #tpu.memory_space<vmem>>, %arg3: memref<1x2xf32, #tpu.memory_space<vmem>>, %arg4: memref<24x2xf32, #tpu.memory_space<vmem>>) attributes {dimension_semantics = [#tpu.dimension_semantics<parallel>], iteration_bounds = array<i64: 1>, scalar_prefetch = 0 : i64, scratch_operands = 0 : i64, tpu.core_type = #tpu.core_type<tc>, window_params = [{transform_indices = @transform_0, window_bounds = array<i64: 24, 32>}, {pipeline_mode = #tpu.pipeline_mode<synchronous>, transform_indices = @transform_1, window_bounds = array<i64: 32, 128>}, {pipeline_mode = #tpu.pipeline_mode<synchronous>, transform_indices = @transform_2, window_bounds = array<i64: 1, 2>}, {transform_indices = @transform_3, window_bounds = array<i64: 24, 2>}]} {
    %c0 = arith.constant 0 : index
    %c0_0 = arith.constant 0 : index
    %0 = vector.load %arg1[%c0, %c0_0] : memref<24x32xf32, #tpu.memory_space<vmem>>, vector<24x32xf32>
    %1 = arith.truncf %0 : vector<24x32xf32> to vector<24x32xbf16>
    %c0_1 = arith.constant 0 : index
    %c0_2 = arith.constant 0 : index
    %2 = vector.load %arg2[%c0_1, %c0_2] : memref<32x128xbf16, #tpu.memory_space<vmem>>, vector<32x128xbf16>
    %cst = arith.constant dense<0.000000e+00> : vector<24x128xf32>
    %3 = tpu.matmul %1, %2, %cst {dimension_numbers = #tpu.dot_dimension_numbers<[1], [0], [0], [1], [0, 0, 1, 1], [], []>} : vector<24x32xbf16>, vector<32x128xbf16>, vector<24x128xf32> -> vector<24x128xf32>
    %4 = vector.extract_strided_slice %3 {offsets = [0, 0], sizes = [24, 2], strides = [1, 1]} : vector<24x128xf32> to vector<24x2xf32>
    %c0_3 = arith.constant 0 : index
    %c0_4 = arith.constant 0 : index
    %5 = vector.load %arg3[%c0_3, %c0_4] : memref<1x2xf32, #tpu.memory_space<vmem>>, vector<1x2xf32>
    %6 = vector.broadcast %5 : vector<1x2xf32> to vector<24x2xf32>
    %7 = arith.addf %4, %6 : vector<24x2xf32>
    %c0_5 = arith.constant 0 : index
    %c0_6 = arith.constant 0 : index
    %8 = vector.load %arg4[%c0_5, %c0_6] : memref<24x2xf32, #tpu.memory_space<vmem>>, vector<24x2xf32>
    tpu.vector_store %arg4[%c0_5, %c0_6], %7 {strides = array<i32>} : memref<24x2xf32, #tpu.memory_space<vmem>>, vector<24x2xf32>,
    return
  }
  func.func @transform_0(%arg0: i32) -> (i32, i32) {
    %c0_i32 = arith.constant 0 : i32
    %c0_i32_0 = arith.constant 0 : i32
    return %arg0, %c0_i32 : i32, i32
  }
  func.func @transform_1(%arg0: i32) -> (i32, i32) {
    %c0_i32 = arith.constant 0 : i32
    %c0_i32_0 = arith.constant 0 : i32
    %c0_i32_1 = arith.constant 0 : i32
    return %c0_i32, %c0_i32_0 : i32, i32
  }
  func.func @transform_2(%arg0: i32) -> (i32, i32) {
    %c0_i32 = arith.constant 0 : i32
    %c0_i32_0 = arith.constant 0 : i32
    %c0_i32_1 = arith.constant 0 : i32
    return %c0_i32, %c0_i32_0 : i32, i32
  }
  func.func @transform_3(%arg0: i32) -> (i32, i32) {
    %c0_i32 = arith.constant 0 : i32
    %c0_i32_0 = arith.constant 0 : i32
    return %arg0, %c0_i32 : i32, i32
  }
}

</mosaic_0001>

<bundles_post_ra>
// kernel: tpu_custom_call.1
= control target key start
LH: loop header
LB: loop body
LE: loop exit
PB: predicated region body
PF: predicated region fallthrough
CT: control target
= control target key end

     0   :  { %8 = vsyncpa [#allocation3], 0  ;;  %s252_s0 = inlined_call_operand.hbm [shape: f32[24,32], index: 0, kind: input, shape index: {}]   ;;  %s253_s1 = inlined_call_operand.hbm [shape: bf16[32,128], index: 1, kind: input, shape index: {}]   ;;  %s254_s2 = inlined_call_operand.vmem [shape: f32[1,2], index: 2, kind: input, shape index: {}]   ;;  %s255_s3 = inlined_call_operand.vmem [shape: f32[24,2], index: 3, kind: output, shape index: {}]  }
   0x1   :  { %9 = vsyncpa [#allocation5], 0  ;;  %s208_s12 = smov [#allocation2]  }
   0x2   :  { %s15_s13 = sshll.u32 %s208_s12, 4  ;;  %s16_s13 = int_to_ptr.vmem [resolvable:$true] %s15_s13 }
   0x3   :  { %s172_s14 = scalar_lea.vmem %s16_s13, 384  ;;  %p177_p1 = scmp.lt.s32.totalorder %s16_s13, %s16_s13 }
   0x4   :  { %p173_p0 = scmp.ne.s32.totalorder %s16_s13, %s172_s14  ;;  %p178_p2 = scmp.lt.s32.totalorder %s172_s14, %s172_s14 }
   0x6   :  { %p179_p3 = por %p178_p2, %p177_p1 }
   0x8   :  { %p180_p4 = pnand %p179_p3, %p173_p0 }
   0xa   :  { %183 = shalt.err (!%p180_p4)
}
   0xb   :  { %s209_s15 = smov 128   ;;  %s210_s16 = smov 8  }
   0xc   :  { %21 = dma.hbm_to_vmem [thread:$0]  %s252_s0, 384, %s16_s13, [#allocation3], %s209_s15, %s209_s15, %s210_s16  }
   0xd   :  { %s211_s19 = smov [#allocation4]  }
   0xe   :  { %s27_s20 = sshll.u32 %s211_s19, 4  ;;  %s28_s20 = int_to_ptr.vmem [resolvable:$true] %s27_s20 }
   0xf   :  { %s192_s21 = scalar_lea.vmem %s28_s20, 256  ;;  %p197_p6 = scmp.lt.s32.totalorder %s28_s20, %s28_s20 }
  0x10   :  { %p193_p5 = scmp.ne.s32.totalorder %s28_s20, %s192_s21  ;;  %p198_p7 = scmp.lt.s32.totalorder %s192_s21, %s192_s21 }
  0x12   :  { %p199_p8 = por %p198_p7, %p197_p6 }
  0x14   :  { %p200_p9 = pnand %p199_p8, %p193_p5 }
  0x16   :  { %203 = shalt.err (!%p200_p9)
}
  0x17   :  { %s212_s22 = smov 64   ;;  %s213_s23 = smov 4  }
  0x18   :  { %33 = dma.hbm_to_vmem [thread:$0]  %s253_s1, 256, %s28_s20, [#allocation5], %s212_s22, %s212_s22, %s213_s23  }
  0x19   :  { %204 = dma.done.wait [#allocation3], 384  }
  0x1a   :  { %205 = vsyncadd [#allocation3], 4294966912 }
  0x1b   :  { %206 = dma.done.wait [#allocation5], 256  }
  0x1c   :  { %207 = vsyncadd [#allocation5], 4294967040  ;;  %v162_v0 = vld [vmem:[#allocation4 + $0x8] sm:$0xff]   ;;  %v163_v1 = vld [vmem:[#allocation4] sm:$0xff]   ;;  %vm64_vm0 = vcmask 261120   ;;  %vm129_vm1 = vcmask 15360  }
  0x1d   :  { %148 = vmatprep.subr.bf16.mxu0 %v162_v0  ;;  %v43_v2 = vld [vmem:[#allocation2] sm:$0xff]  ;;  %v44_v3 = vld [vmem:[#allocation2 + $0x8] sm:$0xff]  ;;  %v45_v5 = vld [vmem:[#allocation2 + $0x10] sm:$0xff] }
  0x1e   :  { %149 = vmatpush3.bf16.msra.mxu0 %v162_v0  ;;  %v46_v4 = vpack.c.bf16 %v44_v3, %v43_v2  ;;  %v47_v6 = vpack.c.bf16 %v45_v5, %v45_v5  ;;  %v143_v7 = vld [vmem:[%s254_s2] ss:$0 sm:$0xff] }
  0x1f   :  { %150 = vmatprep.subr.bf16.mxu0 %v163_v1 }
  0x20   :  { %152 = vmatprep.mubr.msk.bf16.mxu0 %vm64_vm0, %v46_v4 }
  0x22   :  { %151 = vmatpush3.bf16.msra.mxu0 %v163_v1 }
  0x25   :  { %153 = vmatmul.mubr.msk.bf16.vlgmr.msra.gmra.mxu0 %vm64_vm0, %v47_v6 }
  0xe5   :  { %v154_v8 = vpop.f32.mrf.mxu0 }
  0xe6   :  { %v128_v9 = vadd.f32 %v154_v8, %v143_v7 }
  0xe7   :  { %v105_v10 = vpop.f32.mrf.mxu0 }
  0xe8   :  { %132 = vst.msk [vmem:[%s255_s3 + $0x10] sm:$0xff] %vm129_vm1, %v128_v9  ;;  %v126_v11 = vadd.f32 %v143_v7, %v105_v10 }
  0xe9   :  { %v155_v12 = vpop.f32.mrf.mxu0 }
  0xea   :  { %130 = vst.msk [vmem:[%s255_s3] sm:$0xff] %vm129_vm1, %v126_v11 }
  0xeb   :  { %v108_v13 = vpop.f32.mrf.mxu0 }
  0xec   :  { %v127_v14 = vadd.f32 %v143_v7, %v108_v13 }
  0xee   :  { %131 = vst.msk [vmem:[%s255_s3 + $0x8] sm:$0xff] %vm129_vm1, %v127_v14 }
  0xef   :  { %137 = vsyncpa [#allocation3], 1 }
  0xf0   :  { %138 = vsyncpa [#allocation5], 1 }

</bundles_post_ra>
